<compile_context>
chip_gen: v7x
topology: tpu7x:2x2x1
jax: 0.10.0
libtpu: 0.0.40
codegen_flags: <defaults>
</compile_context>

<pallas_src>
import functools

import numpy as np
import jax
import jax.numpy as jnp
from jax.experimental import pallas as pl
from jax.experimental.pallas import tpu as pltpu


# ----------------------------------------------------------------------------
# Kernels
# ----------------------------------------------------------------------------

def _cln_pconv_kernel(x_ref, g_ref, be_ref, w_ref, b_ref, o_ref, *, eps):
    """ChannelwiseLayerNorm over C (lanes) + 1x1 conv (Cin -> Cout) + bias."""
    x = x_ref[0]                                            # (bt, Cin) lane-dense
    mu = jnp.mean(x, axis=-1, keepdims=True)
    xc = x - mu
    var = jnp.mean(xc * xc, axis=-1, keepdims=True)
    xn = xc * jax.lax.rsqrt(var + eps)                      # EUP rsqrt
    xn = xn * g_ref[...] + be_ref[...]
    # single MXU matmul + single full-tile store
    o_ref[0] = (jnp.dot(xn, w_ref[...], preferred_element_type=jnp.float32)
                + b_ref[...])


def _resblock_kernel(*refs, downsample):
    """ResBlock (without the trailing MaxPool1d): two 1x1 convs, folded BN,
    PReLU, residual (+ optional 1x1 downsample conv on the skip path)."""
    if downsample:
        (x_ref, w1_ref, s1_ref, t1_ref, w2_ref, s2_ref, t2_ref,
         wds_ref, a_ref, o_ref) = refs
    else:
        (x_ref, w1_ref, s1_ref, t1_ref, w2_ref, s2_ref, t2_ref,
         a_ref, o_ref) = refs

    x = x_ref[0]                                            # (bt, Cin)
    a1 = a_ref[0]                                           # PReLU slopes (SMEM)
    a2 = a_ref[1]

    h = jnp.dot(x, w1_ref[...], preferred_element_type=jnp.float32)
    h = h * s1_ref[...] + t1_ref[...]                       # BN1 (eval, folded)
    h = jnp.where(h >= 0, h, a1 * h)                        # PReLU1
    h = jnp.dot(h, w2_ref[...], preferred_element_type=jnp.float32)
    h = h * s2_ref[...] + t2_ref[...]                       # BN2 (eval, folded)

    if downsample:
        skip = jnp.dot(x, wds_ref[...], preferred_element_type=jnp.float32)
    else:
        skip = x

    y = h + skip
    y = jnp.where(y >= 0, y, a2 * y)                        # PReLU2
    o_ref[0] = y                                            # single store


def _pconv_sum_kernel(x_ref, w_ref, b_ref, o_ref):
    """1x1 conv (P -> E) + bias, then sum over the time axis."""
    x = x_ref[0]                                            # (T, P)
    y = jnp.dot(x, w_ref[...], preferred_element_type=jnp.float32) + b_ref[...]
    o_ref[0] = jnp.sum(y, axis=0, keepdims=True)            # (1, E)


# ----------------------------------------------------------------------------
# pallas_call wrappers
# ----------------------------------------------------------------------------

def _pick_block_t(T, target=512):
    """Full-T block when small; otherwise a divisor of T that is a multiple
    of 8 (sublane aligned) and <= target, keeping VMEM bounded at large T."""
    if T <= target:
        return T
    for bt in range(target, 7, -1):
        if T % bt == 0 and bt % 8 == 0:
            return bt
    return T


def cln_pointwise_conv(x, gamma, beta, w, bias, *, eps=1e-5):
    """x: (B, T, Cin) time-major.  Returns (B, T, Cout)."""
    B, T, Cin = x.shape
    Cout = w.shape[1]
    bt = _pick_block_t(T)
    nT = T // bt
    g2, be2, b2 = gamma.reshape(1, Cin), beta.reshape(1, Cin), bias.reshape(1, Cout)
    kernel = functools.partial(_cln_pconv_kernel, eps=eps)
    return pl.pallas_call(
        kernel,
        out_shape=jax.ShapeDtypeStruct((B, T, Cout), jnp.float32),
        grid=(B, nT),
        in_specs=[
            pl.BlockSpec((1, bt, Cin), lambda b, t: (b, t, 0)),
            pl.BlockSpec((1, Cin), lambda b, t: (0, 0)),       # resident
            pl.BlockSpec((1, Cin), lambda b, t: (0, 0)),       # resident
            pl.BlockSpec((Cin, Cout), lambda b, t: (0, 0)),    # resident weight
            pl.BlockSpec((1, Cout), lambda b, t: (0, 0)),      # resident bias
        ],
        out_specs=pl.BlockSpec((1, bt, Cout), lambda b, t: (b, t, 0)),
        compiler_params=pltpu.CompilerParams(
            dimension_semantics=("parallel", "parallel")),
    )(x, g2, be2, w, b2)


def resblock(x, blk):
    """x: (B, T, Cin).  Returns (B, T//3, Cout) (ResBlock + MaxPool1d(3))."""
    B, T, Cin = x.shape
    Cout = blk['w1'].shape[1]
    downsample = blk['wds'] is not None
    bt = _pick_block_t(T)
    nT = T // bt
    a = jnp.stack([blk['a1'], blk['a2']]).astype(jnp.float32)   # (2,) -> SMEM

    in_arrays = [x, blk['w1'],
                 blk['s1'].reshape(1, Cout), blk['t1'].reshape(1, Cout),
                 blk['w2'],
                 blk['s2'].reshape(1, Cout), blk['t2'].reshape(1, Cout)]
    in_specs = [
        pl.BlockSpec((1, bt, Cin), lambda b, t: (b, t, 0)),
        pl.BlockSpec((Cin, Cout), lambda b, t: (0, 0)),
        pl.BlockSpec((1, Cout), lambda b, t: (0, 0)),
        pl.BlockSpec((1, Cout), lambda b, t: (0, 0)),
        pl.BlockSpec((Cout, Cout), lambda b, t: (0, 0)),
        pl.BlockSpec((1, Cout), lambda b, t: (0, 0)),
        pl.BlockSpec((1, Cout), lambda b, t: (0, 0)),
    ]
    if downsample:
        in_arrays.append(blk['wds'])
        in_specs.append(pl.BlockSpec((Cin, Cout), lambda b, t: (0, 0)))
    in_arrays.append(a)
    in_specs.append(pl.BlockSpec(memory_space=pltpu.SMEM))

    kernel = functools.partial(_resblock_kernel, downsample=downsample)
    y = pl.pallas_call(
        kernel,
        out_shape=jax.ShapeDtypeStruct((B, T, Cout), jnp.float32),
        grid=(B, nT),
        in_specs=in_specs,
        out_specs=pl.BlockSpec((1, bt, Cout), lambda b, t: (b, t, 0)),
        compiler_params=pltpu.CompilerParams(
            dimension_semantics=("parallel", "parallel")),
    )(*in_arrays)

    # TODO(synk): MaxPool1d(3) stays in plain JAX — in-kernel stride-3 sublane
    # pooling needs reshapes/strided slices that Mosaic handles fragilely.
    To = T // 3
    return y[:, :To * 3, :].reshape(B, To, 3, Cout).max(axis=2)


def pointwise_conv_time_sum(x, w, bias):
    """x: (B, T, P).  Returns (B, E): 1x1 conv + bias then sum over time."""
    B, T, P_ = x.shape
    E = w.shape[1]
    b2 = bias.reshape(1, E)
    out = pl.pallas_call(
        _pconv_sum_kernel,
        out_shape=jax.ShapeDtypeStruct((B, 1, E), jnp.float32),
        grid=(B,),
        in_specs=[
            pl.BlockSpec((1, T, P_), lambda b: (b, 0, 0)),
            pl.BlockSpec((P_, E), lambda b: (0, 0)),
            pl.BlockSpec((1, E), lambda b: (0, 0)),
        ],
        out_specs=pl.BlockSpec((1, 1, E), lambda b: (b, 0, 0)),
        compiler_params=pltpu.CompilerParams(dimension_semantics=("parallel",)),
    )(x, w, b2)
    return out[:, 0, :]


# ----------------------------------------------------------------------------
# Model
# ----------------------------------------------------------------------------

class SpeakerModel:
    """JAX/Pallas port of calibur/model/spex.py::Speaker_Model.forward
    (spk_encoder with eval-mode BatchNorm folded into scale/shift)."""

    def __init__(self, L1, n_filters, O, P, spk_embed_dim, key):
        self.L1 = L1
        C_in = 3 * n_filters
        keys = iter(jax.random.split(key, 64))

        def nk():
            return next(keys)

        def w(cin, cout):
            s = 1.0 / np.sqrt(cin)
            return jax.random.uniform(nk(), (cin, cout), jnp.float32, -s, s)

        def vec(c, lo, hi):
            return jax.random.uniform(nk(), (c,), jnp.float32, lo, hi)

        def fold_bn(c):
            gamma = vec(c, 0.5, 1.5)
            beta = vec(c, -0.1, 0.1)
            mean = vec(c, -0.1, 0.1)
            var = vec(c, 0.5, 1.5)
            scale = gamma / jnp.sqrt(var + 1e-5)
            shift = beta - mean * scale
            return scale, shift

        def make_block(cin, cout):
            blk = {'w1': w(cin, cout)}
            blk['s1'], blk['t1'] = fold_bn(cout)
            blk['a1'] = jnp.float32(0.25)                     # PReLU default
            blk['w2'] = w(cout, cout)
            blk['s2'], blk['t2'] = fold_bn(cout)
            blk['a2'] = jnp.float32(0.25)
            blk['wds'] = w(cin, cout) if cin != cout else None
            return blk

        # ChannelwiseLayerNorm(3N)
        self.ln_g = vec(C_in, 0.5, 1.5)
        self.ln_b = vec(C_in, -0.1, 0.1)
        # Conv1D(3N, O, 1) with bias
        self.w_in = w(C_in, O)
        self.b_in = vec(O, -0.1, 0.1)
        # ResBlock(O,O), ResBlock(O,P), ResBlock(P,P)
        self.blocks = [make_block(O, O), make_block(O, P), make_block(P, P)]
        # Conv1D(P, spk_embed_dim, 1) with bias
        self.w_out = w(P, spk_embed_dim)
        self.b_out = vec(spk_embed_dim, -0.1, 0.1)

    def __call__(self, aux, aux_len):
        # aux: (B, 3N, T) float32 (PyTorch NCT); aux_len: (B,) int32
        x = jnp.transpose(aux, (0, 2, 1))            # one HBM transpose -> (B, T, C)
        x = cln_pointwise_conv(x, self.ln_g, self.ln_b, self.w_in, self.b_in)
        for blk in self.blocks:
            x = resblock(x, blk)
        emb = pointwise_conv_time_sum(x, self.w_out, self.b_out)   # (B, E)
        aux_T = (aux_len - self.L1) // (self.L1 // 2) + 1
        aux_T = aux_T // 3 // 3 // 3
        return emb / aux_T.astype(jnp.float32)[:, None]


# ----------------------------------------------------------------------------
# Pure-numpy float64 reference (PyTorch semantics, eval-mode BN)
# ----------------------------------------------------------------------------

def _ref_forward(model, aux, aux_len):
    x = np.asarray(aux, np.float64)                           # (B, C, T)
    g = np.asarray(model.ln_g, np.float64)
    b = np.asarray(model.ln_b, np.float64)
    mu = x.mean(axis=1, keepdims=True)
    var = x.var(axis=1, keepdims=True)
    x = (x - mu) / np.sqrt(var + 1e-5) * g[None, :, None] + b[None, :, None]
    x = (np.einsum('bct,cd->bdt', x, np.asarray(model.w_in, np.float64))
         + np.asarray(model.b_in, np.float64)[None, :, None])
    for blk in model.blocks:
        w1 = np.asarray(blk['w1'], np.float64)
        s1 = np.asarray(blk['s1'], np.float64)
        t1 = np.asarray(blk['t1'], np.float64)
        w2 = np.asarray(blk['w2'], np.float64)
        s2 = np.asarray(blk['s2'], np.float64)
        t2 = np.asarray(blk['t2'], np.float64)
        a1, a2 = float(blk['a1']), float(blk['a2'])
        h = np.einsum('bct,cd->bdt', x, w1) * s1[None, :, None] + t1[None, :, None]
        h = np.where(h >= 0, h, a1 * h)
        h = np.einsum('bct,cd->bdt', h, w2) * s2[None, :, None] + t2[None, :, None]
        if blk['wds'] is not None:
            skip = np.einsum('bct,cd->bdt', x, np.asarray(blk['wds'], np.float64))
        else:
            skip = x
        y = h + skip
        y = np.where(y >= 0, y, a2 * y)
        B_, C_, T_ = y.shape
        To = T_ // 3
        x = y[:, :, :To * 3].reshape(B_, C_, To, 3).max(axis=3)
    y = (np.einsum('bct,cd->bdt', x, np.asarray(model.w_out, np.float64))
         + np.asarray(model.b_out, np.float64)[None, :, None])
    aux_len = np.asarray(aux_len, np.int64)
    aux_T = (aux_len - model.L1) // (model.L1 // 2) + 1
    aux_T = aux_T // 3 // 3 // 3
    return y.sum(-1) / aux_T[:, None].astype(np.float64)


if __name__ == "__main__":
    # small shapes consistent with the module (defaults scaled down)
    B = 2
    n_filters = 64        # module default N=256
    O_dim, P_dim, E_dim = 64, 128, 64
    L1 = 20
    T = 54                # encoder frames; 54 -> 18 -> 6 -> 2 after three pools

    key = jax.random.PRNGKey(0)
    k_aux, k_model = jax.random.split(key)
    aux = jax.random.normal(k_aux, (B, 3 * n_filters, T), jnp.float32)
    base_len = (T - 1) * (L1 // 2) + L1
    aux_len = jnp.array([base_len, base_len - 7], jnp.int32)

    model = SpeakerModel(L1, n_filters, O_dim, P_dim, E_dim, k_model)
    emb = model(aux, aux_len)
    jax.block_until_ready(emb)

    ref = _ref_forward(model, np.asarray(aux), np.asarray(aux_len))
    np.testing.assert_allclose(np.asarray(emb), ref, rtol=2e-4, atol=2e-4)
    assert emb.shape == (B, E_dim)
    print("KERNEL_OK")
</pallas_src>

<mosaic_0001>
module attributes {stable_mosaic.version = 11 : i64} {
  func.func @_cln_pconv_kernel(%arg0: i32, %arg1: i32, %arg2: memref<1x54x192xf32, #tpu.memory_space<vmem>>, %arg3: memref<1x192xf32, #tpu.memory_space<vmem>>, %arg4: memref<1x192xf32, #tpu.memory_space<vmem>>, %arg5: memref<192x64xf32, #tpu.memory_space<vmem>>, %arg6: memref<1x64xf32, #tpu.memory_space<vmem>>, %arg7: memref<1x54x64xf32, #tpu.memory_space<vmem>>) attributes {dimension_semantics = [#tpu.dimension_semantics<parallel>, #tpu.dimension_semantics<parallel>], iteration_bounds = array<i64: 2, 1>, scalar_prefetch = 0 : i64, scratch_operands = 0 : i64, tpu.core_type = #tpu.core_type<tc>, window_params = [{transform_indices = @transform_0, window_bounds = array<i64: 1, 54, 192>}, {pipeline_mode = #tpu.pipeline_mode<synchronous>, transform_indices = @transform_1, window_bounds = array<i64: 1, 192>}, {pipeline_mode = #tpu.pipeline_mode<synchronous>, transform_indices = @transform_2, window_bounds = array<i64: 1, 192>}, {pipeline_mode = #tpu.pipeline_mode<synchronous>, transform_indices = @transform_3, window_bounds = array<i64: 192, 64>}, {pipeline_mode = #tpu.pipeline_mode<synchronous>, transform_indices = @transform_4, window_bounds = array<i64: 1, 64>}, {transform_indices = @transform_5, window_bounds = array<i64: 1, 54, 64>}]} {
    %c0 = arith.constant 0 : index
    %c0_0 = arith.constant 0 : index
    %c0_1 = arith.constant 0 : index
    %0 = vector.load %arg2[%c0, %c0_0, %c0_1] : memref<1x54x192xf32, #tpu.memory_space<vmem>>, vector<1x54x192xf32>
    %1 = vector.shape_cast %0 : vector<1x54x192xf32> to vector<54x192xf32>
    %cst = arith.constant dense<0.000000e+00> : vector<54xf32>
    %2 = vector.multi_reduction <add>, %1, %cst [1] : vector<54x192xf32> to vector<54xf32>
    %3 = vector.shape_cast %2 : vector<54xf32> to vector<54x1xf32>
    %cst_2 = arith.constant 1.920000e+02 : f32
    %4 = vector.broadcast %cst_2 : f32 to vector<54x1xf32>
    %5 = arith.divf %3, %4 : vector<54x1xf32>
    %6 = vector.broadcast %5 : vector<54x1xf32> to vector<54x192xf32>
    %7 = arith.subf %1, %6 : vector<54x192xf32>
    %8 = arith.mulf %7, %7 : vector<54x192xf32>
    %cst_3 = arith.constant dense<0.000000e+00> : vector<54xf32>
    %9 = vector.multi_reduction <add>, %8, %cst_3 [1] : vector<54x192xf32> to vector<54xf32>
    %10 = vector.shape_cast %9 : vector<54xf32> to vector<54x1xf32>
    %cst_4 = arith.constant 1.920000e+02 : f32
    %11 = vector.broadcast %cst_4 : f32 to vector<54x1xf32>
    %12 = arith.divf %10, %11 : vector<54x1xf32>
    %cst_5 = arith.constant 9.99999974E-6 : f32
    %13 = vector.broadcast %cst_5 : f32 to vector<54x1xf32>
    %14 = arith.addf %12, %13 : vector<54x1xf32>
    %15 = math.rsqrt %14 : vector<54x1xf32>
    %16 = vector.broadcast %15 : vector<54x1xf32> to vector<54x192xf32>
    %17 = arith.mulf %7, %16 : vector<54x192xf32>
    %c0_6 = arith.constant 0 : index
    %c0_7 = arith.constant 0 : index
    %18 = vector.load %arg3[%c0_6, %c0_7] : memref<1x192xf32, #tpu.memory_space<vmem>>, vector<1x192xf32>
    %19 = vector.broadcast %18 : vector<1x192xf32> to vector<54x192xf32>
    %20 = arith.mulf %17, %19 : vector<54x192xf32>
    %c0_8 = arith.constant 0 : index
    %c0_9 = arith.constant 0 : index
    %21 = vector.load %arg4[%c0_8, %c0_9] : memref<1x192xf32, #tpu.memory_space<vmem>>, vector<1x192xf32>
    %22 = vector.broadcast %21 : vector<1x192xf32> to vector<54x192xf32>
    %23 = arith.addf %20, %22 : vector<54x192xf32>
    %c0_10 = arith.constant 0 : index
    %c0_11 = arith.constant 0 : index
    %24 = vector.load %arg5[%c0_10, %c0_11] : memref<192x64xf32, #tpu.memory_space<vmem>>, vector<192x64xf32>
    %cst_12 = arith.constant dense<0.000000e+00> : vector<54x64xf32>
    %25 = tpu.matmul %23, %24, %cst_12 {dimension_numbers = #tpu.dot_dimension_numbers<[1], [0], [0], [1], [0, 0, 1, 1], [], []>} : vector<54x192xf32>, vector<192x64xf32>, vector<54x64xf32> -> vector<54x64xf32>
    %c0_13 = arith.constant 0 : index
    %c0_14 = arith.constant 0 : index
    %26 = vector.load %arg6[%c0_13, %c0_14] : memref<1x64xf32, #tpu.memory_space<vmem>>, vector<1x64xf32>
    %27 = vector.broadcast %26 : vector<1x64xf32> to vector<54x64xf32>
    %28 = arith.addf %25, %27 : vector<54x64xf32>
    %c0_15 = arith.constant 0 : index
    %c0_16 = arith.constant 0 : index
    %c0_17 = arith.constant 0 : index
    %29 = vector.load %arg7[%c0_15, %c0_16, %c0_17] : memref<1x54x64xf32, #tpu.memory_space<vmem>>, vector<1x54x64xf32>
    %30 = vector.shape_cast %29 : vector<1x54x64xf32> to vector<54x64xf32>
    %31 = vector.shape_cast %28 : vector<54x64xf32> to vector<1x54x64xf32>
    tpu.vector_store %arg7[%c0_15, %c0_16, %c0_17], %31 {strides = array<i32>} : memref<1x54x64xf32, #tpu.memory_space<vmem>>, vector<1x54x64xf32>,
    return
  }
  func.func @transform_0(%arg0: i32, %arg1: i32) -> (i32, i32, i32) {
    %c0_i32 = arith.constant 0 : i32
    %c0_i32_0 = arith.constant 0 : i32
    return %arg0, %arg1, %c0_i32 : i32, i32, i32
  }
  func.func @transform_1(%arg0: i32, %arg1: i32) -> (i32, i32) {
    %c0_i32 = arith.constant 0 : i32
    %c0_i32_0 = arith.constant 0 : i32
    %c0_i32_1 = arith.constant 0 : i32
    return %c0_i32, %c0_i32_0 : i32, i32
  }
  func.func @transform_2(%arg0: i32, %arg1: i32) -> (i32, i32) {
    %c0_i32 = arith.constant 0 : i32
    %c0_i32_0 = arith.constant 0 : i32
    %c0_i32_1 = arith.constant 0 : i32
    return %c0_i32, %c0_i32_0 : i32, i32
  }
  func.func @transform_3(%arg0: i32, %arg1: i32) -> (i32, i32) {
    %c0_i32 = arith.constant 0 : i32
    %c0_i32_0 = arith.constant 0 : i32
    %c0_i32_1 = arith.constant 0 : i32
    return %c0_i32, %c0_i32_0 : i32, i32
  }
  func.func @transform_4(%arg0: i32, %arg1: i32) -> (i32, i32) {
    %c0_i32 = arith.constant 0 : i32
    %c0_i32_0 = arith.constant 0 : i32
    %c0_i32_1 = arith.constant 0 : i32
    return %c0_i32, %c0_i32_0 : i32, i32
  }
  func.func @transform_5(%arg0: i32, %arg1: i32) -> (i32, i32, i32) {
    %c0_i32 = arith.constant 0 : i32
    %c0_i32_0 = arith.constant 0 : i32
    return %arg0, %arg1, %c0_i32 : i32, i32, i32
  }
}

</mosaic_0001>

<bundles_post_ra>
// kernel: tpu_custom_call.1
= control target key start
LH: loop header
LB: loop body
LE: loop exit
PB: predicated region body
PF: predicated region fallthrough
CT: control target
= control target key end

     0   :  { %s887_s18 = smov 0   ;;  %s889_s19 = smov 0   ;;  %s1185_s0 = inlined_call_operand.vmem [shape: f32[2,54,192], index: 0, kind: input, shape index: {}]   ;;  %s1186_s1 = inlined_call_operand.vmem [shape: f32[1,192], index: 1, kind: input, shape index: {}]   ;;  %s1187_s2 = inlined_call_operand.vmem [shape: f32[1,192], index: 2, kind: input, shape index: {}]   ;;  %s1188_s3 = inlined_call_operand.vmem [shape: f32[192,64], index: 3, kind: input, shape index: {}]   ;;  %s1189_s4 = inlined_call_operand.vmem [shape: f32[1,64], index: 4, kind: input, shape index: {}]   ;;  %s1190_s5 = inlined_call_operand.vmem [shape: f32[2,54,64], index: 5, kind: output, shape index: {}]  }
   0x1   :  { %s891_s20 = smov 0  }
   0x2 LB: > { %s27_s21 = sadd.s32 1, %s850_s19  ;;  %p718_p0 = scmp.ge.s32.totalorder %s854_s20, 1  ;;  %s854_s20 = sphi %s891_s20, %s15_s20   ;;  %s850_s19 = sphi %s889_s19, %s1192_s19   ;;  %s846_s18 = sphi %s887_s18, %s1191_s18  }
   0x3   : > { %p29_p1 = scmp.ge.s32.totalorder %s27_s21, 2  ;;  %p209_p2 = scmp.lt.s32.totalorder %s854_s20, 3 }
   0x5   : > { %s1194_s21 = smov (%p29_p1, %s27_s21), 0  ;;  %p210_p3 = pnand %p718_p0, %p209_p2 }
   0x6   : > { %p247_p4 = scmp.lt.s32.totalorder (!%p210_p3), %s846_s18, 1  ;;  %vm281_vm0 = vcmask (!%p210_p3), 523264   ;;  %vm306_vm1 = vcmask (!%p210_p3), 1045504   ;;  %vm308_vm2 = vcmask (!%p210_p3), 521216   ;;  %v465_v29 = vld [vmem:[%s1188_s3] sm:$0xff] (!%p210_p3)  ;;  %v466_v30 = vld [vmem:[%s1188_s3 + $0x8] sm:$0xff] (!%p210_p3) }
   0x7   : > { %213 = sbr.rel (%p210_p3) target bundleno = 565 (0x235), region = 40  ;;  %v467_v31 = vld [vmem:[%s1188_s3 + $0x10] sm:$0xff] (!%p210_p3)  ;;  %v856_v32 = vmov (!%p210_p3), 0.0|0.0   ;;  %v732_v33 = vpack.c.bf16 (!%p210_p3), %v466_v30, %v465_v29  ;;  %v468_v34 = vld [vmem:[%s1188_s3 + $0x18] sm:$0xff] (!%p210_p3)  ;;  %v469_v36 = vld [vmem:[%s1188_s3 + $0x20] sm:$0xff] (!%p210_p3) }
   0x8   : > { %731 = vmatprep.subr.bf16.mxu0 (!%p210_p3), %v856_v32  ;;  %767 = vmatprep.subr.bf16.mxu1 (!%p210_p3), %v856_v32  ;;  %v735_v35 = vpack.c.bf16 (!%p210_p3), %v468_v34, %v467_v31  ;;  %v470_v37 = vld [vmem:[%s1188_s3 + $0x28] sm:$0xff] (!%p210_p3)  ;;  %v471_v39 = vld [vmem:[%s1188_s3 + $0x30] sm:$0xff] (!%p210_p3)  ;;  %v472_v40 = vld [vmem:[%s1188_s3 + $0x38] sm:$0xff] (!%p210_p3) }
   0x9   : > { %733 = vmatpush1.bf16.msra.mxu0 (!%p210_p3), %v732_v33  ;;  %779 = vmatpush1.bf16.msra.mxu1 (!%p210_p3), %v732_v33  ;;  %v738_v38 = vpack.c.bf16 (!%p210_p3), %v470_v37, %v469_v36  ;;  %v741_v41 = vpack.c.bf16 (!%p210_p3), %v472_v40, %v471_v39  ;;  %v473_v42 = vld [vmem:[%s1188_s3 + $0x40] sm:$0xff] (!%p210_p3)  ;;  %v474_v43 = vld [vmem:[%s1188_s3 + $0x48] sm:$0xff] (!%p210_p3)  ;;  %v475_v45 = vld [vmem:[%s1188_s3 + $0x50] sm:$0xff] (!%p210_p3) }
   0xa   : > { %734 = vmatprep.subr.bf16.mxu0 (!%p210_p3), %v856_v32  ;;  %768 = vmatprep.subr.bf16.mxu1 (!%p210_p3), %v856_v32  ;;  %v744_v44 = vpack.c.bf16 (!%p210_p3), %v474_v43, %v473_v42  ;;  %v476_v46 = vld [vmem:[%s1188_s3 + $0x58] sm:$0xff] (!%p210_p3)  ;;  %v477_v48 = vld [vmem:[%s1188_s3 + $0x60] sm:$0xff] (!%p210_p3)  ;;  %v478_v49 = vld [vmem:[%s1188_s3 + $0x68] sm:$0xff] (!%p210_p3) }
   0xb   : > { %v747_v47 = vpack.c.bf16 (!%p210_p3), %v476_v46, %v475_v45  ;;  %v750_v50 = vpack.c.bf16 (!%p210_p3), %v478_v49, %v477_v48  ;;  %v479_v45 = vld [vmem:[%s1188_s3 + $0x70] sm:$0xff] (!%p210_p3)  ;;  %v480_v46 = vld [vmem:[%s1188_s3 + $0x78] sm:$0xff] (!%p210_p3)  ;;  %v481_v48 = vld [vmem:[%s1188_s3 + $0x80] sm:$0xff] (!%p210_p3) }
   0xc   : > { %v482_v49 = vld [vmem:[%s1188_s3 + $0x88] sm:$0xff] (!%p210_p3) }
   0xd   : > { %736 = vmatpush1.bf16.msra.mxu0 (!%p210_p3), %v735_v35  ;;  %780 = vmatpush1.bf16.msra.mxu1 (!%p210_p3), %v735_v35 }
   0xe   : > { %s1196_s18 = smov (!%p247_p4, %s846_s18), 1  ;;  %737 = vmatprep.subr.bf16.mxu0 %v856_v32  ;;  %769 = vmatprep.subr.bf16.mxu1 %v856_v32 }
   0xf   : > { %s791_s22 = smul.u32 112, %s1196_s18 }
  0x10   : > { %s792_s11 = smul.u32 56, %s1196_s18 }
  0x11   : > { %s255_s25 = scalar_lea.vmem %s1185_s0, %s791_s22  ;;  %739 = vmatpush1.bf16.msra.mxu0 %v738_v38  ;;  %781 = vmatpush1.bf16.msra.mxu1 %v738_v38 }
  0x12   : > { %v911_v0 = vld [vmem:[%s255_s25] sm:$0xff]  ;;  %v913_v1 = vld [vmem:[%s255_s25 + $0x8] sm:$0xff]  ;;  %v921_v5 = vld [vmem:[%s255_s25 + $0x10] sm:$0xff]  ;;  %740 = vmatprep.subr.bf16.mxu0 %v856_v32  ;;  %770 = vmatprep.subr.bf16.mxu1 %v856_v32  ;;  %s265_s16 = scalar_lea.vmem %s1190_s5, %s792_s11 }
  0x13   : > { %v915_v2 = vld [vmem:[%s255_s25 + $0x40] sm:$0xff]  ;;  %v282_v3 = vsel %vm281_vm0, %v913_v1, 0.0  ;;  %v919_v4 = vld [vmem:[%s255_s25 + $0x48] sm:$0xff]  ;;  %v923_v6 = vld [vmem:[%s255_s25 + $0x18] sm:$0xff] }
  0x14   : > { %v283_v7 = vadd.f32 %v282_v3, %v911_v0  ;;  %v298_v8 = vsel %vm281_vm0, %v919_v4, 0.0  ;;  %v286_v9 = vsel %vm281_vm0, %v923_v6, 0.0  ;;  %v930_v10 = vld [vmem:[%s255_s25 + $0x20] sm:$0xff]  ;;  %v932_v11 = vld [vmem:[%s255_s25 + $0x28] sm:$0xff]  ;;  %v937_v14 = vld [vmem:[%s255_s25 + $0x58] sm:$0xff] }
  0x15   : > { %v299_v12 = vadd.f32 %v298_v8, %v915_v2  ;;  %v290_v13 = vsel %vm281_vm0, %v932_v11, 0.0  ;;  %v939_v15 = vld [vmem:[%s255_s25 + $0x38] sm:$0xff]  ;;  %v287_v16 = vadd.f32 %v286_v9, %v921_v5  ;;  %v943_v18 = vld [vmem:[%s255_s25 + $0x50] sm:$0xff]  ;;  %v302_v19 = vsel %vm281_vm0, %v937_v14, 0.0  ;;  %v951_v22 = vld [vmem:[%s255_s25 + $0x60] sm:$0x3f]  ;;  %742 = vmatpush1.bf16.msra.mxu0 %v741_v41  ;;  %782 = vmatpush1.bf16.msra.mxu1 %v741_v41 }
  0x16   : > { %284 = vadd.xlane.f32.xlu0 %v283_v7  ;;  %v291_v17 = vadd.f32 %v290_v13, %v930_v10  ;;  %v947_v20 = vld [vmem:[%s255_s25 + $0x30] sm:$0xff]  ;;  %v294_v21 = vsel %vm281_vm0, %v939_v15, 0.0  ;;  %v953_v23 = vld [vmem:[%s255_s25 + $0x68] sm:$0x3f]  ;;  %v303_v24 = vadd.f32 %v302_v19, %v943_v18  ;;  %v307_v26 = vsel %vm306_vm1, %v951_v22, 0.0  ;;  %743 = vmatprep.subr.bf16.mxu0 %v856_v32 }
  0x17   : > { %300 = vadd.xlane.f32.xlu1 %v299_v12  ;;  %v295_v25 = vadd.f32 %v294_v21, %v947_v20  ;;  %v309_v27 = vsel %vm308_vm2, %v953_v23, 0.0  ;;  %771 = vmatprep.subr.bf16.mxu1 %v856_v32 }
  0x18   : > { %v310_v28 = vadd.f32 %v309_v27, %v307_v26 }
  0x19   : > { %745 = vmatpush1.bf16.msra.mxu0 %v744_v44  ;;  %783 = vmatpush1.bf16.msra.mxu1 %v744_v44 }
  0x1a   : > { %288 = vadd.xlane.f32.xlu0 %v287_v16  ;;  %746 = vmatprep.subr.bf16.mxu0 %v856_v32 }
  0x1b   : > { %292 = vadd.xlane.f32.xlu1 %v291_v17  ;;  %772 = vmatprep.subr.bf16.mxu1 %v856_v32 }
  0x1d   : > { %748 = vmatpush1.bf16.msra.mxu0 %v747_v47  ;;  %784 = vmatpush1.bf16.msra.mxu1 %v747_v47  ;;  %v753_v47 = vpack.c.bf16 %v480_v46, %v479_v45 }
  0x1e   : > { %304 = vadd.xlane.f32.xlu0 %v303_v24  ;;  %749 = vmatprep.subr.bf16.mxu0 %v856_v32 }
  0x1f   : > { %296 = vadd.xlane.f32.xlu1 %v295_v25  ;;  %773 = vmatprep.subr.bf16.mxu1 %v856_v32 }
  0x21   : > { %751 = vmatpush1.bf16.msra.mxu0 %v750_v50  ;;  %785 = vmatpush1.bf16.msra.mxu1 %v750_v50  ;;  %v756_v50 = vpack.c.bf16 %v482_v49, %v481_v48 }
  0x22   : > { %311 = vadd.xlane.f32.xlu0 %v310_v28  ;;  %752 = vmatprep.subr.bf16.mxu0 %v856_v32 }
  0x23   : > { %774 = vmatprep.subr.bf16.mxu1 %v856_v32 }
  0x25   : > { %754 = vmatpush1.bf16.msra.mxu0 %v753_v47  ;;  %786 = vmatpush1.bf16.msra.mxu1 %v753_v47 }
  0x26   : > { %755 = vmatprep.subr.bf16.mxu0 %v856_v32  ;;  %775 = vmatprep.subr.bf16.mxu1 %v856_v32 }
  0x29   : > { %757 = vmatpush1.bf16.msra.mxu0 %v756_v50  ;;  %787 = vmatpush1.bf16.msra.mxu1 %v756_v50 }
  0x2a   : > { %758 = vmatprep.subr.bf16.mxu0 %v856_v32  ;;  %776 = vmatprep.subr.bf16.mxu1 %v856_v32 }
  0xa3   : > { %v285_v51 = vpop.xlane.xlu0 %284 }
  0xa4   : > { %v314_v52 = vmul.f32 0.0052083335, %v285_v51  ;;  %v301_v53 = vpop.xlane.xlu1 %300  ;;  %v483_v51 = vld [vmem:[%s1188_s3 + $0x90] sm:$0xff] }
  0xa5   : > { %v318_v54 = vmul.f32 0.0052083335, %v301_v53 }
  0xa6   : > { %v1020_v55 = vsub.f32 %v911_v0, %v314_v52  ;;  %v1023_v56 = vsub.f32 %v913_v1, %v314_v52  ;;  %v484_v52 = vld [vmem:[%s1188_s3 + $0x98] sm:$0xff] }
  0xa7   : > { %v1026_v57 = vsub.f32 %v915_v2, %v318_v54  ;;  %v1029_v58 = vsub.f32 %v919_v4, %v318_v54  ;;  %v289_v59 = vpop.xlane.xlu0 %288  ;;  %v759_v53 = vpack.c.bf16 %v484_v52, %v483_v51  ;;  %v485_v54 = vld [vmem:[%s1188_s3 + $0xa0] sm:$0xff] }
  0xa8   : > { %v315_v60 = vmul.f32 0.0052083335, %v289_v59  ;;  %v293_v61 = vpop.xlane.xlu1 %292  ;;  %v335_v62 = vmul.f32 %v1020_v55, %v1020_v55  ;;  %v336_v63 = vmul.f32 %v1023_v56, %v1023_v56  ;;  %v486_v59 = vld [vmem:[%s1188_s3 + $0xa8] sm:$0xff] }
  0xa9   : > { %v316_v0 = vmul.f32 0.0052083335, %v293_v61  ;;  %v343_v1 = vmul.f32 %v1026_v57, %v1026_v57  ;;  %v344_v2 = vmul.f32 %v1029_v58, %v1029_v58  ;;  %760 = vmatpush1.bf16.msra.mxu0 %v759_v53  ;;  %788 = vmatpush1.bf16.msra.mxu1 %v759_v53  ;;  %v487_v61 = vld [vmem:[%s1188_s3 + $0xb0] sm:$0xff] }
  0xaa   : > { %v1040_v3 = vsub.f32 %v921_v5, %v315_v60  ;;  %v1043_v4 = vsub.f32 %v923_v6, %v315_v60  ;;  %v349_v7 = vsel %vm281_vm0, %v336_v63, 0.0  ;;  %761 = vmatprep.subr.bf16.mxu0 %v856_v32  ;;  %777 = vmatprep.subr.bf16.mxu1 %v856_v32  ;;  %v762_v60 = vpack.c.bf16 %v486_v59, %v485_v54 }
  0xab   : > { %v1047_v8 = vsub.f32 %v930_v10, %v316_v0  ;;  %v1050_v9 = vsub.f32 %v932_v11, %v316_v0  ;;  %v305_v12 = vpop.xlane.xlu0 %304  ;;  %v350_v13 = vadd.f32 %v349_v7, %v335_v62  ;;  %v365_v16 = vsel %vm281_vm0, %v344_v2, 0.0  ;;  %v488_v62 = vld [vmem:[%s1188_s3 + $0xb8] sm:$0xff] }
  0xac   : > { %v319_v17 = vmul.f32 0.0052083335, %v305_v12  ;;  %v297_v19 = vpop.xlane.xlu1 %296  ;;  %v337_v5 = vmul.f32 %v1040_v3, %v1040_v3  ;;  %v338_v6 = vmul.f32 %v1043_v4, %v1043_v4  ;;  %v366_v24 = vadd.f32 %v365_v16, %v343_v1 }
  0xad   : > { %351 = vadd.xlane.f32.xlu1 %v350_v13  ;;  %v317_v21 = vmul.f32 0.0052083335, %v297_v19  ;;  %v339_v10 = vmul.f32 %v1047_v8, %v1047_v8  ;;  %v340_v11 = vmul.f32 %v1050_v9, %v1050_v9  ;;  %763 = vmatpush1.bf16.msra.mxu0 %v762_v60  ;;  %v765_v63 = vpack.c.bf16 %v488_v62, %v487_v61 }
  0xae   : > { %v1062_v25 = vsub.f32 %v943_v18, %v319_v17  ;;  %v1065_v26 = vsub.f32 %v937_v14, %v319_v17  ;;  %v353_v27 = vsel %vm281_vm0, %v338_v6, 0.0  ;;  %789 = vmatpush1.bf16.msra.mxu1 %v762_v60  ;;  %764 = vmatprep.subr.bf16.mxu0 %v856_v32  ;;  %v415_v2 = vlaneseq }
  0xaf   : > { %v1069_v28 = vsub.f32 %v947_v20, %v317_v21  ;;  %v1072_v29 = vsub.f32 %v939_v15, %v317_v21  ;;  %v312_v30 = vpop.xlane.xlu0 %311  ;;  %v354_v31 = vadd.f32 %v353_v27, %v337_v5  ;;  %v357_v33 = vsel %vm281_vm0, %v340_v11, 0.0  ;;  %778 = vmatprep.subr.bf16.mxu1 %v856_v32 }
  0xb0   : > { %v320_v34 = vmul.f32 0.0052083335, %v312_v30  ;;  %v345_v18 = vmul.f32 %v1062_v25, %v1062_v25  ;;  %v346_v14 = vmul.f32 %v1065_v26, %v1065_v26  ;;  %v358_v35 = vadd.f32 %v357_v33, %v339_v10  ;;  %v413_v33 = vld [vmem:[%s1186_s1] sm:$0x3] }
  0xb1   : > { %367 = vadd.xlane.f32.xlu1 %v366_v24  ;;  %355 = vadd.xlane.f32.xlu0 %v354_v31  ;;  %v341_v20 = vmul.f32 %v1069_v28, %v1069_v28  ;;  %v342_v15 = vmul.f32 %v1072_v29, %v1072_v29  ;;  %v416_v19 = vshrl.u32 %v415_v2, 7 }
  0xb2   : > { %v1084_v36 = vsub.f32 %v951_v22, %v320_v34  ;;  %v1087_v37 = vsub.f32 %v953_v23, %v320_v34  ;;  %v369_v38 = vsel %vm281_vm0, %v346_v14, 0.0  ;;  %766 = vmatpush1.bf16.msra.mxu0 %v765_v63  ;;  %790 = vmatpush1.bf16.msra.mxu1 %v765_v63 }
  0xb3   : > { %v370_v39 = vadd.f32 %v369_v38, %v345_v18  ;;  %v361_v40 = vsel %vm281_vm0, %v342_v15, 0.0  ;;  %v417_v11 = vsub.s32 0, %v416_v19  ;;  %v421_v27 = vsub.s32 1, %v416_v19 }
  0xb4   : > { %v347_v41 = vmul.f32 %v1084_v36, %v1084_v36  ;;  %v348_v42 = vmul.f32 %v1087_v37, %v1087_v37  ;;  %v362_v43 = vadd.f32 %v361_v40, %v341_v20  ;;  %v439_v20 = vld [vmem:[%s1187_s2] sm:$0x3] }
  0xb5   : > { %359 = vadd.xlane.f32.xlu0 %v358_v35  ;;  %371 = vadd.xlane.f32.xlu1 %v370_v39  ;;  %v418_v15 = vrot.slane %v413_v33, %v417_v11  ;;  %v422_v38 = vrot.slane %v413_v33, %v421_v27 }
  0xb6   : > { %v373_v22 = vsel %vm306_vm1, %v347_v41, 0.0  ;;  %v374_v44 = vsel %vm308_vm2, %v348_v42, 0.0 }
  0xb7   : > { %v375_v23 = vadd.f32 %v374_v44, %v373_v22  ;;  %v448_v22 = vrot.slane %v439_v20, %v421_v27 }
  0xb9   : > { %363 = vadd.xlane.f32.xlu0 %v362_v43  ;;  %376 = vadd.xlane.f32.xlu1 %v375_v23  ;;  %v444_v43 = vrot.slane %v439_v20, %v417_v11 }
 0x13a   : > { %v352_v0 = vpop.xlane.xlu1 %351 }
 0x13b   : > { %v378_v1 = vmul.f32 0.0052083335, %v352_v0 }
 0x13d   : > { %v385_v7 = vadd.f32 1e-05, %v378_v1 }
 0x13e   : > { %v368_v12 = vpop.xlane.xlu1 %367  ;;  %v356_v13 = vpop.xlane.xlu0 %355 }
 0x13f   : > { %818 = vrsqrt.f32 %v385_v7  ;;  %v382_v16 = vmul.f32 0.0052083335, %v368_v12  ;;  %v379_v17 = vmul.f32 0.0052083335, %v356_v13 }
 0x141   : > { %v389_v5 = vadd.f32 1e-05, %v382_v16  ;;  %v386_v6 = vadd.f32 1e-05, %v379_v17 }
 0x142   : > { %v372_v21 = vpop.xlane.xlu1 %371  ;;  %v360_v24 = vpop.xlane.xlu0 %359 }
 0x143   : > { %820 = vrsqrt.f32 %v389_v5  ;;  %v383_v10 = vmul.f32 0.0052083335, %v372_v21  ;;  %v380_v32 = vmul.f32 0.0052083335, %v360_v24 }
 0x144   : > { %822 = vrsqrt.f32 %v386_v6 }
 0x145   : > { %v390_v30 = vadd.f32 1e-05, %v383_v10  ;;  %v387_v31 = vadd.f32 1e-05, %v380_v32 }
 0x146   : > { %v377_v34 = vpop.xlane.xlu1 %376  ;;  %v364_v18 = vpop.xlane.xlu0 %363 }
 0x147   : > { %824 = vrsqrt.f32 %v390_v30  ;;  %v384_v14 = vmul.f32 0.0052083335, %v377_v34  ;;  %v381_v35 = vmul.f32 0.0052083335, %v364_v18 }
 0x148   : > { %826 = vrsqrt.f32 %v387_v31 }
 0x149   : > { %v819_v39 = vpop.eup %818  ;;  %v391_v40 = vadd.f32 1e-05, %v384_v14  ;;  %v388_v41 = vadd.f32 1e-05, %v381_v35 }
 0x14a   : > { %v400_v42 = vmul.f32 %v819_v39, %v1023_v56  ;;  %v399_v44 = vmul.f32 %v819_v39, %v1020_v55 }
 0x14b   : > { %828 = vrsqrt.f32 %v391_v40 }
 0x14c   : > { %830 = vrsqrt.f32 %v388_v41  ;;  %v426_v23 = vmul.f32 %v422_v38, %v400_v42  ;;  %v425_v45 = vmul.f32 %v418_v15, %v399_v44 }
 0x14d   : > { %v821_v46 = vpop.eup %820 }
 0x14e   : > { %v823_v47 = vpop.eup %822  ;;  %v452_v48 = vadd.f32 %v448_v22, %v426_v23  ;;  %v451_v49 = vadd.f32 %v444_v43, %v425_v45  ;;  %v408_v50 = vmul.f32 %v821_v46, %v1029_v58  ;;  %v407_v51 = vmul.f32 %v821_v46, %v1026_v57 }
 0x14f   : > { %v402_v52 = vmul.f32 %v823_v47, %v1043_v4  ;;  %v401_v56 = vmul.f32 %v823_v47, %v1040_v3 }
 0x150   : > { %722 = vmatprep.mubr.msk.f32.mxu0 %vm281_vm0, %v452_v48  ;;  %v434_v53 = vmul.f32 %v422_v38, %v408_v50  ;;  %v433_v55 = vmul.f32 %v418_v15, %v407_v51 }
 0x151   : > { %v825_v54 = vpop.eup %824  ;;  %582 = vmatmul.mubr.f32.vlgmr.msra.gmra.mrb[0].mxu0 %v451_v49  ;;  %v428_v59 = vmul.f32 %v422_v38, %v402_v52  ;;  %v427_v60 = vmul.f32 %v418_v15, %v401_v56 }
 0x152   : > { %v827_v61 = vpop.eup %826  ;;  %v460_v62 = vadd.f32 %v448_v22, %v434_v53  ;;  %v459_v63 = vadd.f32 %v444_v43, %v433_v55  ;;  %v410_v0 = vmul.f32 %v825_v54, %v1065_v26  ;;  %v409_v58 = vmul.f32 %v825_v54, %v1062_v25 }
 0x153   : > { %v454_v57 = vadd.f32 %v448_v22, %v428_v59  ;;  %v453_v1 = vadd.f32 %v444_v43, %v427_v60  ;;  %v404_v4 = vmul.f32 %v827_v61, %v1050_v9  ;;  %v403_v3 = vmul.f32 %v827_v61, %v1047_v8 }
 0x154   : > { %726 = vmatprep.mubr.msk.f32.mxu1 %vm281_vm0, %v460_v62  ;;  %v436_v2 = vmul.f32 %v422_v38, %v410_v0  ;;  %v435_v7 = vmul.f32 %v418_v15, %v409_v58 }
 0x155   : > { %v829_v12 = vpop.eup %828  ;;  %723 = vmatprep.mubr.msk.f32.mxu0 %vm281_vm0, %v454_v57  ;;  %602 = vmatmul.mubr.f32.vlgmr.msra.gmra.mrb[0].mxu1 %v459_v63  ;;  %v430_v13 = vmul.f32 %v422_v38, %v404_v4  ;;  %v429_v16 = vmul.f32 %v418_v15, %v403_v3 }
 0x156   : > { %v831_v17 = vpop.eup %830  ;;  %587 = vmatmul.mubr.f32.gmra.mrb[2].mxu0 %v453_v1  ;;  %v462_v26 = vadd.f32 %v448_v22, %v436_v2  ;;  %v461_v25 = vadd.f32 %v444_v43, %v435_v7  ;;  %v412_v19 = vmul.f32 %v829_v12, %v1087_v37  ;;  %v411_v9 = vmul.f32 %v829_v12, %v1084_v36 }
 0x157   : > { %v456_v5 = vadd.f32 %v448_v22, %v430_v13  ;;  %v455_v8 = vadd.f32 %v444_v43, %v429_v16  ;;  %v406_v6 = vmul.f32 %v831_v17, %v1072_v29  ;;  %v405_v21 = vmul.f32 %v831_v17, %v1069_v28  ;;  %v721_v28 = vld [vmem:[%s1189_s4] ss:$0 sm:$0xff] }
 0x158   : > { %727 = vmatprep.mubr.msk.f32.mxu1 %vm281_vm0, %v462_v26  ;;  %v438_v24 = vmul.f32 %v422_v38, %v412_v19  ;;  %v437_v10 = vmul.f32 %v418_v15, %v411_v9 }
 0x159   : > { %724 = vmatprep.mubr.msk.f32.mxu0 %vm281_vm0, %v456_v5  ;;  %607 = vmatmul.mubr.f32.gmra.mrb[2].mxu1 %v461_v25  ;;  %v432_v32 = vmul.f32 %v422_v38, %v406_v6  ;;  %v431_v11 = vmul.f32 %v418_v15, %v405_v21 }
 0x15a   : > { %592 = vmatmul.mubr.f32.gmra.mrb[4].mxu0 %v455_v8  ;;  %v464_v37 = vadd.f32 %v448_v22, %v438_v24  ;;  %v463_v27 = vadd.f32 %v444_v43, %v437_v10 }
 0x15b   : > { %v458_v36 = vadd.f32 %v448_v22, %v432_v32  ;;  %v457_v30 = vadd.f32 %v444_v43, %v431_v11 }
 0x15c   : > { %728 = vmatprep.mubr.msk.f32.mxu1 %vm281_vm0, %v464_v37 }
 0x15d   : > { %725 = vmatprep.mubr.msk.f32.mxu0 %vm281_vm0, %v458_v36  ;;  %612 = vmatmul.mubr.f32.gmra.mrb[4].mxu1 %v463_v27 }
 0x15e   : > { %597 = vmatmul.mubr.f32.gmra.mrb[6].mxu0 %v457_v30 }
 0x224   : > { %v583_v29 = vpop.f32.mrb[0].mxu0 }
 0x225   : > { %v584_v31 = vadd.f32 %v721_v28, %v583_v29  ;;  %v585_v33 = vpop.f32.mrb[1].mxu0 }
 0x227   : > { %617 = vst.msk [vmem:[%s265_s16] sm:$0xff] %vm281_vm0, %v584_v31 }
 0x228   : > { %v603_v34 = vpop.f32.mrb[0].mxu1 }
 0x229   : > { %v588_v18 = vpop.f32.mrb[2].mxu0  ;;  %v604_v14 = vadd.f32 %v721_v28, %v603_v34  ;;  %v605_v35 = vpop.f32.mrb[1].mxu1 }
 0x22a   : > { %v589_v20 = vadd.f32 %v721_v28, %v588_v18  ;;  %v590_v15 = vpop.f32.mrb[3].mxu0 }
 0x22b   : > { %621 = vst.msk [vmem:[%s265_s16 + $0x20] sm:$0xff] %vm281_vm0, %v604_v14 }
 0x22c   : > { %618 = vst.msk [vmem:[%s265_s16 + $0x8] sm:$0xff] %vm281_vm0, %v589_v20  ;;  %v608_v38 = vpop.f32.mrb[2].mxu1 }
 0x22d   : > { %v593_v39 = vpop.f32.mrb[4].mxu0  ;;  %v609_v40 = vadd.f32 %v721_v28, %v608_v38  ;;  %v610_v41 = vpop.f32.mrb[3].mxu1 }
 0x22e   : > { %v594_v42 = vadd.f32 %v721_v28, %v593_v39  ;;  %v595_v43 = vpop.f32.mrb[5].mxu0 }
 0x22f   : > { %622 = vst.msk [vmem:[%s265_s16 + $0x28] sm:$0xff] %vm281_vm0, %v609_v40 }
 0x230   : > { %619 = vst.msk [vmem:[%s265_s16 + $0x10] sm:$0xff] %vm281_vm0, %v594_v42  ;;  %v613_v22 = vpop.f32.mrb[4].mxu1 }
 0x231   : > { %v598_v44 = vpop.f32.mrb[6].mxu0  ;;  %v614_v23 = vadd.f32 %v721_v28, %v613_v22  ;;  %v615_v45 = vpop.f32.mrb[5].mxu1 }
 0x232   : > { %v599_v46 = vadd.f32 %v721_v28, %v598_v44  ;;  %v600_v47 = vpop.f32.mrb[7].mxu0 }
 0x233   : > { %623 = vst.msk [vmem:[%s265_s16 + $0x30] sm:$0x3f] %vm308_vm2, %v614_v23 }
 0x234   : > { %620 = vst.msk [vmem:[%s265_s16 + $0x18] sm:$0xff] %vm281_vm0, %v599_v46 }
 0x235 PF: > { %s15_s20 = sadd.s32 1, %s854_s20   ;;  %s1191_s18 = smov %s850_s19 }
 0x236   : > { %p12_p5 = scmp.ge.s32.totalorder %s15_s20, 4   ;;  %s1192_s19 = smov %s1194_s21 }
 0x238   :  { %14 = sbr.rel (!%p12_p5) target bundleno = 2 (0x2), region = 70 }

</bundles_post_ra>
